<compile_context>
chip_gen: v5e
topology: v5e:2x2
jax: 0.10.0
libtpu: 0.0.40
codegen_flags: <defaults>
</compile_context>

<pallas_src>
import math

import jax
import jax.numpy as jnp
from jax import lax
from jax.experimental import pallas as pl
from jax.experimental.pallas import tpu as pltpu


# Below ~1 MiB the kernel-dispatch + DMA-descriptor overhead dominates; XLA
# slicing is strictly faster for tiny RL-style batches (perf-review bailout).
_SMALL_PROBLEM_BYTES = 1 << 20


def _make_split_dma_kernel(half: int):
    """Kernel body: copy the two column halves of x straight HBM -> HBM."""

    def kernel(x_hbm, pi_hbm, vf_hbm, sem):
        # Two whole-array strided DMAs, no VMEM staging, no compute.
        cp_pi = pltpu.make_async_copy(
            x_hbm.at[:, pl.ds(0, half)], pi_hbm, sem.at[0])
        cp_vf = pltpu.make_async_copy(
            x_hbm.at[:, pl.ds(half, half)], vf_hbm, sem.at[1])
        cp_pi.start()
        cp_vf.start()
        cp_pi.wait()
        cp_vf.wait()

    return kernel


def split_double_nature_cnn(features: jax.Array,
                            last_layer_dim_pi: int,
                            last_layer_dim_vf: int,
                            use_pallas: bool | None = None):
    """Equivalent of SplitDoubleNatureCnn.forward.

    features: [..., feature_dim] with feature_dim == 2 * last_layer_dim_pi
    returns:  (latent_pi [..., last_layer_dim_pi],
               latent_vf [..., last_layer_dim_vf])

    use_pallas: None -> heuristic (Pallas only for lane-aligned halves and
    problems large enough that dispatch overhead is amortized); True/False
    forces the choice (True still requires half % 128 == 0).
    """
    *lead, F = features.shape
    assert F == last_layer_dim_pi + last_layer_dim_vf
    assert F // 2 == last_layer_dim_pi == last_layer_dim_vf
    half = last_layer_dim_pi
    axis = features.ndim - 1

    def _xla_split():
        return (lax.slice_in_dim(features, 0, half, axis=axis),
                lax.slice_in_dim(features, half, F, axis=axis))

    total_bytes = features.size * features.dtype.itemsize
    if use_pallas is None:
        use_pallas = (half % 128 == 0) and (total_bytes >= _SMALL_PROBLEM_BYTES)
    if (not use_pallas) or (half % 128 != 0):
        # Zero-FLOP split: let XLA fuse the column windows into neighbours.
        return _xla_split()

    B = math.prod(lead) if lead else 1
    x2d = features.reshape(B, F)

    pi2d, vf2d = pl.pallas_call(
        _make_split_dma_kernel(half),
        out_shape=(
            jax.ShapeDtypeStruct((B, half), x2d.dtype),
            jax.ShapeDtypeStruct((B, half), x2d.dtype),
        ),
        # Raw HBM refs in and out; the body issues the DMAs itself.
        in_specs=[pl.BlockSpec(memory_space=pl.ANY)],
        out_specs=(pl.BlockSpec(memory_space=pl.ANY),
                   pl.BlockSpec(memory_space=pl.ANY)),
        scratch_shapes=[pltpu.SemaphoreType.DMA((2,))],
    )(x2d)

    out_shape = tuple(lead) + (half,)
    return pi2d.reshape(out_shape), vf2d.reshape(out_shape)


if __name__ == "__main__":
    key = jax.random.PRNGKey(0)
    k1, k2, k3 = jax.random.split(key, 3)

    feature_dim = 1024                  # module default -> two 512-wide latents
    latent_pi = latent_vf = feature_dim // 2

    # --- Test 1: small default batch -> heuristic picks the XLA-slice path. ---
    batch = 16
    features = jax.random.normal(k1, (batch, feature_dim), dtype=jnp.float32)
    pi, vf = split_double_nature_cnn(features, latent_pi, latent_vf)
    pi, vf = jax.block_until_ready((pi, vf))
    assert pi.shape == (batch, latent_pi) and vf.shape == (batch, latent_vf)
    assert jnp.array_equal(pi, features[..., :latent_pi])
    assert jnp.array_equal(vf, features[..., latent_pi:])

    # --- Test 2: same small shape, forced through the Pallas HBM->HBM DMA
    # kernel so the kernel path is exercised and verified on TPU. ------------
    pi_p, vf_p = split_double_nature_cnn(
        features, latent_pi, latent_vf, use_pallas=True)
    pi_p, vf_p = jax.block_until_ready((pi_p, vf_p))
    assert jnp.array_equal(pi_p, features[..., :latent_pi])
    assert jnp.array_equal(vf_p, features[..., latent_pi:])

    # --- Test 3: leading dims + a size above the small-problem bailout so the
    # heuristic itself selects the Pallas DMA kernel (4*128*1024*4B = 2 MiB). --
    features_3d = jax.random.normal(
        k2, (4, 128, feature_dim), dtype=jnp.float32)
    pi_b, vf_b = split_double_nature_cnn(features_3d, latent_pi, latent_vf)
    pi_b, vf_b = jax.block_until_ready((pi_b, vf_b))
    assert pi_b.shape == (4, 128, latent_pi)
    assert vf_b.shape == (4, 128, latent_vf)
    assert jnp.array_equal(pi_b, features_3d[..., :latent_pi])
    assert jnp.array_equal(vf_b, features_3d[..., latent_pi:])

    print("KERNEL_OK")
</pallas_src>

<mosaic_0001>
module attributes {stable_mosaic.version = 11 : i64} {
  func.func @kernel(%arg0: memref<16x1024xf32, #tpu.memory_space<any>>, %arg1: memref<16x512xf32, #tpu.memory_space<any>>, %arg2: memref<16x512xf32, #tpu.memory_space<any>>, %arg3: memref<2x!tpu.dma_semaphore, #tpu.memory_space<semaphore_mem>>) attributes {dimension_semantics = [], scalar_prefetch = 0 : i64, scratch_operands = 1 : i64, tpu.core_type = #tpu.core_type<tc>} {
    %c0_i32 = arith.constant 0 : i32
    %c0_i32_0 = arith.constant 0 : i32
    %c0_i32_1 = arith.constant 0 : i32
    %0 = tpu.memref_slice %arg0[%c0_i32_0, %c0_i32_1] : memref<16x1024xf32, #tpu.memory_space<any>> -> memref<16x512xf32, #tpu.memory_space<any>>
    %1 = tpu.memref_slice %arg3[%c0_i32] : memref<2x!tpu.dma_semaphore, #tpu.memory_space<semaphore_mem>> -> memref<1x!tpu.dma_semaphore, #tpu.memory_space<semaphore_mem>>
    %2 = tpu.memref_squeeze %1 : memref<1x!tpu.dma_semaphore, #tpu.memory_space<semaphore_mem>> -> memref<!tpu.dma_semaphore, #tpu.memory_space<semaphore_mem>>
    tpu.enqueue_dma source(%0 : memref<16x512xf32, #tpu.memory_space<any>>) target(%arg1 : memref<16x512xf32, #tpu.memory_space<any>>) target_semaphore(%2 : memref<!tpu.dma_semaphore, #tpu.memory_space<semaphore_mem>>)
    %c1_i32 = arith.constant 1 : i32
    %c0_i32_2 = arith.constant 0 : i32
    %c512_i32 = arith.constant 512 : i32
    %3 = tpu.memref_slice %arg0[%c0_i32_2, %c512_i32] : memref<16x1024xf32, #tpu.memory_space<any>> -> memref<16x512xf32, #tpu.memory_space<any>>
    %4 = tpu.memref_slice %arg3[%c1_i32] : memref<2x!tpu.dma_semaphore, #tpu.memory_space<semaphore_mem>> -> memref<1x!tpu.dma_semaphore, #tpu.memory_space<semaphore_mem>>
    %5 = tpu.memref_squeeze %4 : memref<1x!tpu.dma_semaphore, #tpu.memory_space<semaphore_mem>> -> memref<!tpu.dma_semaphore, #tpu.memory_space<semaphore_mem>>
    tpu.enqueue_dma source(%3 : memref<16x512xf32, #tpu.memory_space<any>>) target(%arg2 : memref<16x512xf32, #tpu.memory_space<any>>) target_semaphore(%5 : memref<!tpu.dma_semaphore, #tpu.memory_space<semaphore_mem>>)
    %c0_i32_3 = arith.constant 0 : i32
    %c0_i32_4 = arith.constant 0 : i32
    %c0_i32_5 = arith.constant 0 : i32
    %6 = tpu.memref_slice %arg0[%c0_i32_4, %c0_i32_5] : memref<16x1024xf32, #tpu.memory_space<any>> -> memref<16x512xf32, #tpu.memory_space<any>>
    %7 = tpu.memref_slice %arg3[%c0_i32_3] : memref<2x!tpu.dma_semaphore, #tpu.memory_space<semaphore_mem>> -> memref<1x!tpu.dma_semaphore, #tpu.memory_space<semaphore_mem>>
    %8 = tpu.memref_squeeze %7 : memref<1x!tpu.dma_semaphore, #tpu.memory_space<semaphore_mem>> -> memref<!tpu.dma_semaphore, #tpu.memory_space<semaphore_mem>>
    tpu.wait_dma2 semaphore(%8 : memref<!tpu.dma_semaphore, #tpu.memory_space<semaphore_mem>>) src(%6 : memref<16x512xf32, #tpu.memory_space<any>>) dst(%arg1 : memref<16x512xf32, #tpu.memory_space<any>>)
    %c1_i32_6 = arith.constant 1 : i32
    %c0_i32_7 = arith.constant 0 : i32
    %c512_i32_8 = arith.constant 512 : i32
    %9 = tpu.memref_slice %arg0[%c0_i32_7, %c512_i32_8] : memref<16x1024xf32, #tpu.memory_space<any>> -> memref<16x512xf32, #tpu.memory_space<any>>
    %10 = tpu.memref_slice %arg3[%c1_i32_6] : memref<2x!tpu.dma_semaphore, #tpu.memory_space<semaphore_mem>> -> memref<1x!tpu.dma_semaphore, #tpu.memory_space<semaphore_mem>>
    %11 = tpu.memref_squeeze %10 : memref<1x!tpu.dma_semaphore, #tpu.memory_space<semaphore_mem>> -> memref<!tpu.dma_semaphore, #tpu.memory_space<semaphore_mem>>
    tpu.wait_dma2 semaphore(%11 : memref<!tpu.dma_semaphore, #tpu.memory_space<semaphore_mem>>) src(%9 : memref<16x512xf32, #tpu.memory_space<any>>) dst(%arg2 : memref<16x512xf32, #tpu.memory_space<any>>)
    return
  }
}

</mosaic_0001>

<bundles_post_ra>
// kernel: tpu_custom_call.1
= control target key start
LH: loop header
LB: loop body
LE: loop exit
PB: predicated region body
PF: predicated region fallthrough
CT: control target
= control target key end

     0   :  { %s79_s15 = smov 1024   ;;  %s80_s16 = smov 512   ;;  %s114_s0 = inlined_call_operand.hbm [shape: f32[16,1024], index: 0, kind: input, shape index: {}]   ;;  %s115_s1 = inlined_call_operand.hbm [shape: f32[16,512], index: 1, kind: output, shape index: {0}]   ;;  %s116_s2 = inlined_call_operand.hbm [shape: f32[16,512], index: 2, kind: output, shape index: {1}]  }
   0x1   :  { %s12_s11 = sshll.u32 %s114_s0, 4  ;;  %s14_s14 = sshll.u32 %s115_s1, 4  ;;  %s13_s11 = int_to_ptr.hbm [resolvable:$true] %s12_s11  ;;  %s15_s14 = int_to_ptr.hbm [resolvable:$true] %s14_s14 }
   0x2   :  { %19 = sst [smem:[#allocation4]] %s79_s15  ;;  %s81_s17 = smov 32  }
   0x3   :  { %21 = sst [smem:[#allocation4 + $0x1]] %s80_s16  ;;  %s26_s20 = scalar_lea.hbm %s114_s0, 32 }
   0x4   :  { %23 = sst [smem:[#allocation4 + $0x2]] %s81_s17  ;;  %s82_s21 = smov [#allocation2]  }
   0x5   :  { %s83_s22 = smov [#allocation3]   ;;  %s84_s23 = smov 0  }
   0x6   :  { %25 = dma.general %s13_s11, 1024, %s15_s14, %s82_s21, %s83_s22, [#allocation4], %s84_s23, 0  }
   0x7   :  { %39 = sst [smem:[#allocation6]] %s79_s15  ;;  %s32_s24 = sshll.u32 %s26_s20, 4  ;;  %s33_s24 = int_to_ptr.hbm [resolvable:$true] %s32_s24 }
   0x8   :  { %41 = sst [smem:[#allocation6 + $0x1]] %s80_s16  ;;  %s34_s26 = sshll.u32 %s116_s2, 4  ;;  %s35_s26 = int_to_ptr.hbm [resolvable:$true] %s34_s26 }
   0x9   :  { %43 = sst [smem:[#allocation6 + $0x2]] %s81_s17  ;;  %s85_s27 = smov [#allocation2 + $0x1]  }
   0xa   :  { %s86_s28 = smov [#allocation5]  }
   0xb   :  { %45 = dma.general %s33_s24, 1024, %s35_s26, %s85_s27, %s86_s28, [#allocation6], %s84_s23, 0  }
   0xc   :  { %75 = dma.done.wait [#allocation2], 1024 }
   0xd   :  { %76 = vsyncadd [#allocation2], 4294966272 }
   0xe   :  { %77 = dma.done.wait [#allocation2 + $0x1], 1024 }
   0xf   :  { %78 = vsyncadd [#allocation2 + $0x1], 4294966272 }
  0x10   :  { %52 = vsyncmov [#allocation2] }
  0x13   :  { %s53_s0 = vpop.sfrf %52 }
  0x14   :  { %p65_p0 = scmp.ne.s32.totalorder %s53_s0, 0 }
  0x16   :  { %57 = shalt.err (%p65_p0)  }
  0x17   :  { %59 = vsyncmov [#allocation2 + $0x1] }
  0x1a   :  { %s60_s29 = vpop.sfrf %59 }
  0x1b   :  { %p66_p1 = scmp.ne.s32.totalorder %s60_s29, 0 }
  0x1d   :  { %64 = shalt.err (%p66_p1)  }

</bundles_post_ra>
